<compile_context>
chip_gen: v7x
topology: tpu7x:2x2x1
jax: 0.10.0
libtpu: 0.0.40
codegen_flags: <defaults>
</compile_context>

<pallas_src>
import functools

import jax
import jax.numpy as jnp
from jax.experimental import pallas as pl
from jax.experimental.pallas import tpu as pltpu


def _dice_partials_kernel(x_ref, t_ref, inter_out, union_out,
                          inter_acc, union_acc, *,
                          hw, tile, ns_per_chunk, needs_mask):
    chunk = pl.program_id(1)
    s = pl.program_id(2)
    ns = pl.num_programs(2)

    @pl.when(s == 0)
    def _():
        inter_acc[...] = jnp.zeros_like(inter_acc)
        union_acc[...] = jnp.zeros_like(union_acc)

    def accumulate(masked):
        x = x_ref[0].astype(jnp.float32)            # (C, TILE) logits (native dtype in HBM)
        t = t_ref[0].astype(jnp.int32)              # (1, TILE) labels
        C = x.shape[0]

        if masked:
            # Only traced for partial / out-of-range tiles (static needs_mask).
            g = chunk * ns_per_chunk + s            # global spatial-tile index
            lane = jax.lax.broadcasted_iota(jnp.int32, (1, tile), 1)
            valid = (g * tile + lane) < hw          # (1, TILE)
            x = jnp.where(valid, x, 0.0)            # sanitize padded/stale lanes
            t = jnp.where(valid, t, -1)             # -1 never matches any class

        # Softmax over the class (sublane) axis == torch.softmax(inputs, dim=1).
        m = jnp.max(x, axis=0, keepdims=True)
        e = jnp.exp(x - m)                                                  # (C, TILE)
        inv = pl.reciprocal(jnp.sum(e, axis=0, keepdims=True), approx=False)  # (1, TILE)
        if masked:
            inv = inv * valid.astype(jnp.float32)
        pe = e * inv                                                        # (C, TILE)

        # One-hot of targets along the class axis (F.one_hot + permute to NCHW).
        cls = jax.lax.broadcasted_iota(jnp.int32, (C, tile), 0)
        one_hot = (cls == t).astype(jnp.float32)                            # (C, TILE)

        # Per-class partial spatial sums, accumulated across tiles in VMEM.
        inter_acc[...] += jnp.sum(pe * one_hot, axis=1, keepdims=True)      # (C, 1)
        union_acc[...] += jnp.sum(pe + one_hot, axis=1, keepdims=True)      # fused union

    if not needs_mask:
        accumulate(False)
    else:
        g = chunk * ns_per_chunk + s
        is_full = (g + 1) * tile <= hw

        @pl.when(is_full)
        def _():
            accumulate(False)

        @pl.when(jnp.logical_not(is_full))
        def _():
            accumulate(True)

    @pl.when(s == ns - 1)
    def _():
        inter_out[0, 0] = inter_acc[...]            # (C, 1) partials for this (b, chunk)
        union_out[0, 0] = union_acc[...]


def _vmem_budgets():
    """(tile-sizing budget, compiler vmem limit) derived per TPU generation."""
    try:
        phys = int(pltpu.get_tpu_info().vmem_capacity_bytes)
    except Exception:
        phys = 64 * 1024 * 1024            # most conservative (v7x per-TensorCore)
    sizing = min(int(phys * 0.55), 72 * 1024 * 1024)
    limit = min(int(phys * 0.70), 96 * 1024 * 1024)
    return sizing, limit


def _pick_spatial_tile(hw, c, in_bytes, t_bytes, sizing_budget):
    # Per-lane VMEM bytes: 2x double-buffered logits + labels tiles, ~4 full-tile
    # f32 intermediates (x, e, pe, one_hot), plus small (1, tile) temporaries.
    per_lane = 2 * (c * in_bytes + t_bytes) + 16 * c + 32
    tile_budget = max(128, sizing_budget // per_lane)
    # ~2 MiB of logits per grid step is enough to amortize the ~0.35us step cost.
    tile_target = max(128, (2 * 1024 * 1024) // max(1, c * in_bytes))
    tile = min(tile_budget, tile_target)
    if tile >= hw:
        return hw                               # whole image per step (full-dim block)
    return max(128, (tile // 128) * 128)        # lane-dense multiple of 128


def dice_loss(logits, targets, smooth=1.0, num_spatial_chunks=None,
              tile_override=None):
    """logits: (B, C, H, W) float (any dtype); targets: (B, H, W) int labels.

    Keep targets in the narrowest int dtype (int8/uint8 for C<=255): the kernel
    casts in VMEM, so no wrapper-side widening is done.
    """
    B, C, H, W = logits.shape
    HW = H * W
    in_bytes = jnp.dtype(logits.dtype).itemsize
    t_bytes = jnp.dtype(targets.dtype).itemsize

    sizing_budget, vmem_limit = _vmem_budgets()
    if tile_override is not None:
        tile = min(int(tile_override), HW)
        if tile < HW:
            tile = max(128, (tile // 128) * 128)
    else:
        tile = _pick_spatial_tile(HW, C, in_bytes, t_bytes, sizing_budget)

    total_tiles = (HW + tile - 1) // tile

    if num_spatial_chunks is None:
        # v7x has 2 TensorCores/chip; with an odd batch the batch axis alone
        # leaves a core idle, so split the spatial reduction into 2 parallel
        # chunks and combine the partials in the wrapper.
        num_spatial_chunks = 1 if (B % 2 == 0) else 2
    n_chunks = max(1, min(num_spatial_chunks, total_tiles))
    ns_per_chunk = (total_tiles + n_chunks - 1) // n_chunks
    padded_tiles = ns_per_chunk * n_chunks
    needs_mask = (HW % tile != 0) or (padded_tiles != total_tiles)

    x = logits.reshape(B, C, HW)           # native dtype, no widening
    t = targets.reshape(B, 1, HW)          # native (narrow) int dtype

    def x_map(b, ch, s):
        g = jnp.minimum(ch * ns_per_chunk + s, total_tiles - 1)  # clamp padded steps
        return (b, 0, g)

    def t_map(b, ch, s):
        g = jnp.minimum(ch * ns_per_chunk + s, total_tiles - 1)
        return (b, 0, g)

    out_map = lambda b, ch, s: (b, ch, 0, 0)

    kernel = functools.partial(_dice_partials_kernel, hw=HW, tile=tile,
                               ns_per_chunk=ns_per_chunk, needs_mask=needs_mask)

    cost = pl.CostEstimate(
        flops=int(8 * B * C * HW),
        transcendentals=int(B * C * HW),
        bytes_accessed=int(B * C * HW * in_bytes + B * HW * t_bytes
                           + 2 * B * n_chunks * C * 4))

    inter_p, union_p = pl.pallas_call(
        kernel,
        out_shape=(jax.ShapeDtypeStruct((B, n_chunks, C, 1), jnp.float32),
                   jax.ShapeDtypeStruct((B, n_chunks, C, 1), jnp.float32)),
        grid_spec=pltpu.PrefetchScalarGridSpec(
            num_scalar_prefetch=0,
            grid=(B, n_chunks, ns_per_chunk),          # reduction axis innermost
            in_specs=[
                pl.BlockSpec((1, C, tile), x_map),
                pl.BlockSpec((1, 1, tile), t_map),
            ],
            out_specs=[
                pl.BlockSpec((1, 1, C, 1), out_map),
                pl.BlockSpec((1, 1, C, 1), out_map),
            ],
            scratch_shapes=[pltpu.VMEM((C, 1), jnp.float32),
                            pltpu.VMEM((C, 1), jnp.float32)],
        ),
        compiler_params=pltpu.CompilerParams(
            dimension_semantics=("parallel", "parallel", "arbitrary"),
            vmem_limit_bytes=vmem_limit),
        cost_estimate=cost,
    )(x, t)

    # Tiny (B, n_chunks, C) finish in plain JAX: combine chunk partials, dice, mean.
    inter = jnp.sum(inter_p[..., 0], axis=1)           # (B, C)
    union = jnp.sum(union_p[..., 0], axis=1)           # (B, C)
    dice = (2.0 * inter + smooth) / (union + smooth)
    return 1.0 - jnp.mean(dice)


def _dice_loss_ref(logits, targets, smooth=1.0):
    """Pure-JAX reference mirroring the PyTorch forward."""
    p = jax.nn.softmax(logits.astype(jnp.float32), axis=1)             # (B,C,H,W)
    one_hot = jax.nn.one_hot(targets, logits.shape[1], axis=1,
                             dtype=jnp.float32)                        # (B,C,H,W)
    inter = jnp.sum(p * one_hot, axis=(2, 3))
    union = jnp.sum(p, axis=(2, 3)) + jnp.sum(one_hot, axis=(2, 3))
    dice = (2.0 * inter + smooth) / (union + smooth)
    return 1.0 - jnp.mean(dice)


if __name__ == "__main__":
    key = jax.random.PRNGKey(0)
    k1, k2, k3, k4, k5, k6 = jax.random.split(key, 6)

    # Case 1: canonical small shape (single spatial tile, single chunk, even batch).
    B, C, H, W = 2, 4, 16, 16
    logits = jax.random.normal(k1, (B, C, H, W), dtype=jnp.float32)
    targets = jax.random.randint(k2, (B, H, W), 0, C, dtype=jnp.int32)
    loss = jax.block_until_ready(dice_loss(logits, targets, smooth=1.0))
    ref = _dice_loss_ref(logits, targets, smooth=1.0)
    assert jnp.allclose(loss, ref, atol=1e-4), (loss, ref)

    # Case 2: odd batch -> 2 parallel spatial chunks; multiple tiles + masked tail.
    B2, C2, H2, W2 = 1, 4, 20, 20
    logits2 = jax.random.normal(k3, (B2, C2, H2, W2), dtype=jnp.float32)
    targets2 = jax.random.randint(k4, (B2, H2, W2), 0, C2, dtype=jnp.int32)
    loss2 = jax.block_until_ready(
        dice_loss(logits2, targets2, smooth=1.0, tile_override=128))
    ref2 = _dice_loss_ref(logits2, targets2, smooth=1.0)
    assert jnp.allclose(loss2, ref2, atol=1e-4), (loss2, ref2)

    # Case 3: bf16 logits + int8 labels (narrow-dtype path), odd tile count across
    # 2 chunks -> exercises the clamped / fully-out-of-range padded grid step.
    B3, C3, H3, W3 = 1, 4, 18, 18
    logits3 = jax.random.normal(k5, (B3, C3, H3, W3), dtype=jnp.bfloat16)
    targets3 = jax.random.randint(k6, (B3, H3, W3), 0, C3,
                                  dtype=jnp.int32).astype(jnp.int8)
    loss3 = jax.block_until_ready(
        dice_loss(logits3, targets3, smooth=1.0, tile_override=128))
    ref3 = _dice_loss_ref(logits3, targets3, smooth=1.0)
    assert jnp.allclose(loss3, ref3, atol=1e-3), (loss3, ref3)

    print("KERNEL_OK")
</pallas_src>

<mosaic_0001>
module attributes {stable_mosaic.version = 11 : i64} {
  func.func @_dice_partials_kernel(%arg0: i32, %arg1: i32, %arg2: i32, %arg3: memref<1x4x256xf32, #tpu.memory_space<vmem>>, %arg4: memref<1x1x256xi32, #tpu.memory_space<vmem>>, %arg5: memref<1x1x4x1xf32, #tpu.memory_space<vmem>>, %arg6: memref<1x1x4x1xf32, #tpu.memory_space<vmem>>, %arg7: memref<4x1xf32, #tpu.memory_space<vmem>>, %arg8: memref<4x1xf32, #tpu.memory_space<vmem>>) attributes {dimension_semantics = [#tpu.dimension_semantics<parallel>, #tpu.dimension_semantics<parallel>, #tpu.dimension_semantics<arbitrary>], iteration_bounds = array<i64: 2, 1, 1>, scalar_prefetch = 0 : i64, scratch_operands = 2 : i64, tpu.core_type = #tpu.core_type<tc>, window_params = [{transform_indices = @transform_0, window_bounds = array<i64: 1, 4, 256>}, {transform_indices = @transform_1, window_bounds = array<i64: 1, 1, 256>}, {transform_indices = @transform_2, window_bounds = array<i64: 1, 1, 4, 1>}, {transform_indices = @transform_3, window_bounds = array<i64: 1, 1, 4, 1>}]} {
    %c0_i32 = arith.constant 0 : i32
    %0 = arith.cmpi eq, %arg2, %c0_i32 : i32
    %1 = arith.extui %0 : i1 to i32
    %c0_i32_0 = arith.constant 0 : i32
    %2 = arith.cmpi ne, %1, %c0_i32_0 : i32
    scf.if %2 {
      %cst_19 = arith.constant 0.000000e+00 : f32
      %37 = vector.broadcast %cst_19 : f32 to vector<4x1xf32>
      %c0_20 = arith.constant 0 : index
      %c0_21 = arith.constant 0 : index
      %38 = vector.load %arg7[%c0_20, %c0_21] : memref<4x1xf32, #tpu.memory_space<vmem>>, vector<4x1xf32>
      tpu.vector_store %arg7[%c0_20, %c0_21], %37 {strides = array<i32>} : memref<4x1xf32, #tpu.memory_space<vmem>>, vector<4x1xf32>,
      %cst_22 = arith.constant 0.000000e+00 : f32
      %39 = vector.broadcast %cst_22 : f32 to vector<4x1xf32>
      %c0_23 = arith.constant 0 : index
      %c0_24 = arith.constant 0 : index
      %40 = vector.load %arg8[%c0_23, %c0_24] : memref<4x1xf32, #tpu.memory_space<vmem>>, vector<4x1xf32>
      tpu.vector_store %arg8[%c0_23, %c0_24], %39 {strides = array<i32>} : memref<4x1xf32, #tpu.memory_space<vmem>>, vector<4x1xf32>,
    } else {
    }
    %c0 = arith.constant 0 : index
    %c0_1 = arith.constant 0 : index
    %c0_2 = arith.constant 0 : index
    %3 = vector.load %arg3[%c0, %c0_1, %c0_2] : memref<1x4x256xf32, #tpu.memory_space<vmem>>, vector<1x4x256xf32>
    %4 = vector.shape_cast %3 : vector<1x4x256xf32> to vector<4x256xf32>
    %c0_3 = arith.constant 0 : index
    %c0_4 = arith.constant 0 : index
    %c0_5 = arith.constant 0 : index
    %5 = vector.load %arg4[%c0_3, %c0_4, %c0_5] : memref<1x1x256xi32, #tpu.memory_space<vmem>>, vector<1x1x256xi32>
    %6 = vector.shape_cast %5 : vector<1x1x256xi32> to vector<1x256xi32>
    %cst = arith.constant dense<0xFF800000> : vector<256xf32>
    %7 = vector.multi_reduction <maximumf>, %4, %cst [0] : vector<4x256xf32> to vector<256xf32>
    %8 = vector.shape_cast %7 : vector<256xf32> to vector<1x256xf32>
    %9 = vector.broadcast %8 : vector<1x256xf32> to vector<4x256xf32>
    %10 = arith.subf %4, %9 : vector<4x256xf32>
    %11 = math.exp %10 : vector<4x256xf32>
    %cst_6 = arith.constant dense<0.000000e+00> : vector<256xf32>
    %12 = vector.multi_reduction <add>, %11, %cst_6 [0] : vector<4x256xf32> to vector<256xf32>
    %13 = vector.shape_cast %12 : vector<256xf32> to vector<1x256xf32>
    %14 = tpu.reciprocal %13 : vector<1x256xf32> -> vector<1x256xf32>
    %15 = vector.broadcast %14 : vector<1x256xf32> to vector<4x256xf32>
    %16 = arith.mulf %11, %15 : vector<4x256xf32>
    %17 = tpu.iota {dimensions = array<i32: 0>} : vector<4x256xi32>
    %18 = vector.broadcast %6 : vector<1x256xi32> to vector<4x256xi32>
    %19 = arith.cmpi eq, %17, %18 : vector<4x256xi32>
    %20 = arith.extui %19 : vector<4x256xi1> to vector<4x256xi32>
    %21 = arith.sitofp %20 : vector<4x256xi32> to vector<4x256xf32>
    %c0_7 = arith.constant 0 : index
    %c0_8 = arith.constant 0 : index
    %22 = vector.load %arg7[%c0_7, %c0_8] : memref<4x1xf32, #tpu.memory_space<vmem>>, vector<4x1xf32>
    %23 = arith.mulf %16, %21 : vector<4x256xf32>
    %cst_9 = arith.constant dense<0.000000e+00> : vector<4xf32>
    %24 = vector.multi_reduction <add>, %23, %cst_9 [1] : vector<4x256xf32> to vector<4xf32>
    %25 = vector.shape_cast %24 : vector<4xf32> to vector<4x1xf32>
    %26 = arith.addf %22, %25 : vector<4x1xf32>
    %c0_10 = arith.constant 0 : index
    %c0_11 = arith.constant 0 : index
    %27 = vector.load %arg7[%c0_10, %c0_11] : memref<4x1xf32, #tpu.memory_space<vmem>>, vector<4x1xf32>
    tpu.vector_store %arg7[%c0_10, %c0_11], %26 {strides = array<i32>} : memref<4x1xf32, #tpu.memory_space<vmem>>, vector<4x1xf32>,
    %c0_12 = arith.constant 0 : index
    %c0_13 = arith.constant 0 : index
    %28 = vector.load %arg8[%c0_12, %c0_13] : memref<4x1xf32, #tpu.memory_space<vmem>>, vector<4x1xf32>
    %29 = arith.addf %16, %21 : vector<4x256xf32>
    %cst_14 = arith.constant dense<0.000000e+00> : vector<4xf32>
    %30 = vector.multi_reduction <add>, %29, %cst_14 [1] : vector<4x256xf32> to vector<4xf32>
    %31 = vector.shape_cast %30 : vector<4xf32> to vector<4x1xf32>
    %32 = arith.addf %28, %31 : vector<4x1xf32>
    %c0_15 = arith.constant 0 : index
    %c0_16 = arith.constant 0 : index
    %33 = vector.load %arg8[%c0_15, %c0_16] : memref<4x1xf32, #tpu.memory_space<vmem>>, vector<4x1xf32>
    tpu.vector_store %arg8[%c0_15, %c0_16], %32 {strides = array<i32>} : memref<4x1xf32, #tpu.memory_space<vmem>>, vector<4x1xf32>,
    %c0_i32_17 = arith.constant 0 : i32
    %34 = arith.cmpi eq, %arg2, %c0_i32_17 : i32
    %35 = arith.extui %34 : i1 to i32
    %c0_i32_18 = arith.constant 0 : i32
    %36 = arith.cmpi ne, %35, %c0_i32_18 : i32
    scf.if %36 {
      %c0_19 = arith.constant 0 : index
      %c0_20 = arith.constant 0 : index
      %37 = vector.load %arg7[%c0_19, %c0_20] : memref<4x1xf32, #tpu.memory_space<vmem>>, vector<4x1xf32>
      %c0_21 = arith.constant 0 : index
      %c0_22 = arith.constant 0 : index
      %c0_23 = arith.constant 0 : index
      %c0_24 = arith.constant 0 : index
      %38 = vector.load %arg5[%c0_21, %c0_22, %c0_23, %c0_24] : memref<1x1x4x1xf32, #tpu.memory_space<vmem>>, vector<1x1x4x1xf32>
      %39 = vector.shape_cast %38 : vector<1x1x4x1xf32> to vector<4x1xf32>
      %40 = vector.shape_cast %37 : vector<4x1xf32> to vector<1x1x4x1xf32>
      tpu.vector_store %arg5[%c0_21, %c0_22, %c0_23, %c0_24], %40 {strides = array<i32>} : memref<1x1x4x1xf32, #tpu.memory_space<vmem>>, vector<1x1x4x1xf32>,
      %c0_25 = arith.constant 0 : index
      %c0_26 = arith.constant 0 : index
      %41 = vector.load %arg8[%c0_25, %c0_26] : memref<4x1xf32, #tpu.memory_space<vmem>>, vector<4x1xf32>
      %c0_27 = arith.constant 0 : index
      %c0_28 = arith.constant 0 : index
      %c0_29 = arith.constant 0 : index
      %c0_30 = arith.constant 0 : index
      %42 = vector.load %arg6[%c0_27, %c0_28, %c0_29, %c0_30] : memref<1x1x4x1xf32, #tpu.memory_space<vmem>>, vector<1x1x4x1xf32>
      %43 = vector.shape_cast %42 : vector<1x1x4x1xf32> to vector<4x1xf32>
      %44 = vector.shape_cast %41 : vector<4x1xf32> to vector<1x1x4x1xf32>
      tpu.vector_store %arg6[%c0_27, %c0_28, %c0_29, %c0_30], %44 {strides = array<i32>} : memref<1x1x4x1xf32, #tpu.memory_space<vmem>>, vector<1x1x4x1xf32>,
    } else {
    }
    return
  }
  func.func @transform_0(%arg0: i32, %arg1: i32, %arg2: i32) -> (i32, i32, i32) {
    %c1_i32 = arith.constant 1 : i32
    %0 = arith.muli %arg1, %c1_i32 : i32
    %1 = arith.addi %0, %arg2 : i32
    %c0_i32 = arith.constant 0 : i32
    %2 = arith.minsi %1, %c0_i32 : i32
    %c0_i32_0 = arith.constant 0 : i32
    %c0_i32_1 = arith.constant 0 : i32
    return %arg0, %c0_i32_0, %2 : i32, i32, i32
  }
  func.func @transform_1(%arg0: i32, %arg1: i32, %arg2: i32) -> (i32, i32, i32) {
    %c1_i32 = arith.constant 1 : i32
    %0 = arith.muli %arg1, %c1_i32 : i32
    %1 = arith.addi %0, %arg2 : i32
    %c0_i32 = arith.constant 0 : i32
    %2 = arith.minsi %1, %c0_i32 : i32
    %c0_i32_0 = arith.constant 0 : i32
    %c0_i32_1 = arith.constant 0 : i32
    return %arg0, %c0_i32_0, %2 : i32, i32, i32
  }
  func.func @transform_2(%arg0: i32, %arg1: i32, %arg2: i32) -> (i32, i32, i32, i32) {
    %c0_i32 = arith.constant 0 : i32
    %c0_i32_0 = arith.constant 0 : i32
    %c0_i32_1 = arith.constant 0 : i32
    return %arg0, %arg1, %c0_i32, %c0_i32_0 : i32, i32, i32, i32
  }
  func.func @transform_3(%arg0: i32, %arg1: i32, %arg2: i32) -> (i32, i32, i32, i32) {
    %c0_i32 = arith.constant 0 : i32
    %c0_i32_0 = arith.constant 0 : i32
    %c0_i32_1 = arith.constant 0 : i32
    return %arg0, %arg1, %c0_i32, %c0_i32_0 : i32, i32, i32, i32
  }
}

</mosaic_0001>

<bundles_post_ra>
// kernel: tpu_custom_call.1
= control target key start
LH: loop header
LB: loop body
LE: loop exit
PB: predicated region body
PF: predicated region fallthrough
CT: control target
= control target key end

     0   :  { %9 = vsyncpa [#allocation5], 0  ;;  %s985_s0 = inlined_call_operand.hbm [shape: f32[2,4,256], index: 0, kind: input, shape index: {}]   ;;  %s986_s1 = inlined_call_operand.hbm [shape: s32[2,1,256], index: 1, kind: input, shape index: {}]   ;;  %s987_s2 = inlined_call_operand.vmem [shape: f32[2,1,4,1], index: 2, kind: output, shape index: {0}]   ;;  %s988_s3 = inlined_call_operand.vmem [shape: f32[2,1,4,1], index: 3, kind: output, shape index: {1}]  }
   0x1   :  { %11 = vsyncpa [#allocation5 + $0x1], 0 }
   0x2   :  { %12 = vsyncpa [#allocation7], 0 }
   0x3   :  { %14 = vsyncpa [#allocation7 + $0x1], 0  ;;  %s799_s12 = smov 0   ;;  %s801_s13 = smov 0  }
   0x4   :  { %s803_s14 = smov 0   ;;  %s805_s15 = smov 0  }
   0x5   :  { %s807_s16 = smov 0   ;;  %s809_s17 = smov 0  }
   0x6 LB: > { %s571_s18 = sadd.s32 4294967295, %s774_s17   ;;  %s39_s19 = sadd.s32 1, %s770_s16  ;;  %s774_s17 = sphi %s809_s17, %s20_s17   ;;  %s770_s16 = sphi %s807_s16, %s1002_s16   ;;  %s766_s15 = sphi %s805_s15, %s1001_s15   ;;  %s762_s14 = sphi %s803_s14, %s1000_s14   ;;  %s758_s13 = sphi %s801_s13, %s999_s13   ;;  %s754_s12 = sphi %s799_s12, %s998_s12  }
   0x7   : > { %p41_p0 = scmp.ge.s32.totalorder %s39_s19, 2  ;;  %s54_s20 = sadd.s32 1, %s762_s14 }
   0x8   : > { %p61_p1 = scmp.ne.s32.totalorder %s762_s14, %s758_s13  ;;  %p62_p2 = scmp.eq.s32.totalorder %s774_s17, 0 }
   0x9   : > { %s1004_s19 = smov (%p41_p0, %s39_s19), 0  ;;  %p67_p4 = scmp.ne.s32.totalorder %s758_s13, %s754_s12 }
   0xa   : > { %p835_p3 = por %p62_p2, %p61_p1  ;;  %s49_s22 = ssub.s32 %s770_s16, %s1004_s19 }
   0xb   : > { %p68_p5 = scmp.eq.s32.totalorder %s571_s18, 0  ;;  %p52_p6 = scmp.eq.s32.totalorder %s49_s22, 0 }
   0xc   : > { %p603_p8 = scmp.lt.s32.totalorder %s774_s17, 2  ;;  %s851_s25 = sand.u32 1, %s762_s14  }
   0xd   : > { %p842_p7 = por %p68_p5, %p67_p4  ;;  %s590_s26 = sshll.u32 %s770_s16, 7 }
   0xe   : > { %s848_s24 = scalar_select %p52_p6, %s762_s14, %s54_s20  }
   0xf   : > { %s991_s23 = scalar_select %p842_p7, 1, 0 }
  0x10   : > { %s575_s27 = sshll.u32 %s851_s25, 3  ;;  %s858_s30 = scalar_lea.hbm %s985_s0, %s590_s26 }
  0x11   : > { %s185_s4 = scalar_lea.vmem [#allocation4], %s575_s27  ;;  %p862_p9 = pnand %p603_p8, %p835_p3 }
  0x12   : > { %s198_s5 = sshll.u32 %s185_s4, 4  ;;  %s182_s7 = scalar_lea.sflag [#allocation5], %s851_s25  ;;  %s866_s5 = int_to_ptr.vmem [resolvable:$true] %s198_s5 }
  0x13   : > { %s660_s8 = scalar_lea.hbm %s858_s30, 128  ;;  %p662_p13 = pneg %p862_p9 }
  0x14   : > { %p661_p12 = scmp.ne.s32.totalorder %s858_s30, %s660_s8  ;;  %s665_s11 = scalar_lea.hbm %s985_s0, 256 }
  0x15   : > { %p666_p2 = scmp.lt.u32.totalorder %s858_s30, %s985_s0  ;;  %p667_p3 = scmp.lt.u32.totalorder %s665_s11, %s660_s8 }
  0x16   : > { %p663_p0 = pnand %p662_p13, %p661_p12  ;;  %p669_p5 = scmp.lt.u32.totalorder %s660_s8, %s858_s30 }
  0x17   : > { %p668_p4 = por %p667_p3, %p666_p2 }
  0x18   : > { %p664_p1 = pneg %p663_p0 }
  0x19   : > { %p670_p6 = por %p669_p5, %p668_p4 }
  0x1b   : > { %p671_p8 = pnand %p670_p6, %p664_p1 }
  0x1d   : > { %674 = shalt.err (!%p671_p8)
}
  0x1e   : > { %s675_s20 = scalar_lea.vmem %s866_s5, 128  ;;  %s776_s21 = smov [#allocation4]  }
  0x1f   : > { %p676_p12 = scmp.ne.s32.totalorder %s866_s5, %s675_s20  ;;  %s680_s22 = sshll.u32 %s776_s21, 4  ;;  %s681_s22 = int_to_ptr.vmem [resolvable:$false] %s680_s22 }
  0x20   : > { %s682_s26 = scalar_lea.vmem %s681_s22, 256  ;;  %p683_p11 = scmp.lt.s32.totalorder %s866_s5, %s681_s22 }
  0x21   : > { %p678_p0 = pnand %p676_p12, %p662_p13  ;;  %p684_p2 = scmp.lt.s32.totalorder %s682_s26, %s675_s20 }
  0x23   : > { %p679_p10 = pneg %p678_p0  ;;  %p685_p3 = por %p684_p2, %p683_p11 }
  0x25   : > { %p686_p4 = pnand %p685_p3, %p679_p10 }
  0x27   : > { %689 = shalt.err (!%p686_p4)
}
  0x28   : > { %599 = dma.hbm_to_vmem [thread:$0]  (!%p862_p9), %s858_s30, 128, %s866_s5, %s182_s7  }
  0x29   : > { %p993_p1 = scmp.lt.s32.totalorder %s774_s17, 3  ;;  %p994_p5 = scmp.ge.s32.totalorder %s774_s17, 1 }
  0x2a   : > { %s578_s28 = sshll.u32 %s851_s25, 1  ;;  %s591_s29 = sshll.u32 %s770_s16, 5 }
  0x2b   : > { %p900_p6 = pnand %p994_p5, %p993_p1  ;;  %s909_s9 = scalar_lea.hbm %s986_s1, %s591_s29 }
  0x2c   : > { %s209_s10 = scalar_lea.vmem [#allocation6], %s578_s28  ;;  %s206_s30 = scalar_lea.sflag [#allocation7], %s851_s25 }
  0x2d   : > { %s995_s27 = scalar_select %p900_p6, 1, 0 }
  0x2e   : > { %s222_s11 = sshll.u32 %s209_s10, 4  ;;  %s690_s5 = scalar_lea.hbm %s909_s9, 32  ;;  %s223_s11 = int_to_ptr.vmem [resolvable:$true] %s222_s11 }
  0x2f   : > { %p691_p10 = scmp.ne.s32.totalorder %s909_s9, %s690_s5  ;;  %s695_s18 = scalar_lea.hbm %s986_s1, 64 }
  0x30   : > { %p696_p12 = scmp.lt.u32.totalorder %s909_s9, %s986_s1  ;;  %p697_p0 = scmp.lt.u32.totalorder %s695_s18, %s690_s5 }
  0x31   : > { %p693_p11 = pnand %p691_p10, %p662_p13  ;;  %p699_p3 = scmp.lt.u32.totalorder %s690_s5, %s909_s9 }
  0x32   : > { %p698_p2 = por %p697_p0, %p696_p12 }
  0x33   : > { %p694_p8 = pneg %p693_p11 }
  0x34   : > { %p700_p4 = por %p699_p3, %p698_p2 }
  0x36   : > { %p701_p1 = pnand %p700_p4, %p694_p8 }
  0x38   : > { %704 = shalt.err (!%p701_p1)
}
  0x39   : > { %s705_s25 = scalar_lea.vmem %s223_s11, 32  ;;  %s777_s22 = smov [#allocation6]  }
  0x3a   : > { %p706_p5 = scmp.ne.s32.totalorder %s223_s11, %s705_s25  ;;  %s710_s26 = sshll.u32 %s777_s22, 4  ;;  %s711_s26 = int_to_ptr.vmem [resolvable:$false] %s710_s26 }
  0x3b   : > { %s712_s28 = scalar_lea.vmem %s711_s26, 64  ;;  %p713_p7 = scmp.lt.s32.totalorder %s223_s11, %s711_s26 }
  0x3c   : > { %p708_p10 = pnand %p706_p5, %p662_p13  ;;  %p714_p6 = scmp.lt.s32.totalorder %s712_s28, %s705_s25 }
  0x3e   : > { %p709_p11 = pneg %p708_p10  ;;  %p715_p0 = por %p714_p6, %p713_p7 }
  0x40   : > { %p716_p12 = pnand %p715_p0, %p709_p11 }
  0x42   : > { %719 = shalt.err (!%p716_p12)
}
  0x43   : > { %602 = dma.hbm_to_vmem [thread:$0]  (!%p862_p9), %s909_s9, 32, %s223_s11, %s206_s30  }
  0x44   : > { %p996_p8 = scmp.ne.s32.totalorder %s995_s27, 0 }
  0x45   : > { %s233_s29 = sand.u32 (!%p996_p8), 1, %s758_s13   ;;  %p997_p13 = scmp.ne.s32.totalorder (!%p996_p8), %s991_s23, 0 }
  0x46   : > { %231 = sbr.rel (%p996_p8) target bundleno = 308 (0x134), region = 28  ;;  %s582_s4 = sshll.u32 (!%p996_p8), %s233_s29, 3 }
  0x47   : > { %s234_s8 = scalar_lea.sflag (!%p996_p8), [#allocation5], %s233_s29  ;;  %s237_s10 = scalar_lea.vmem (!%p996_p8), [#allocation4], %s582_s4 }
  0x4d   : > { %745 = dma.done.wait (%p997_p13), %s234_s8, 128  }
  0x4e   : > { %747 = vsyncadd (%p997_p13), %s234_s8, 4294967168  ;;  %s583_s5 = sshll.u32 %s233_s29, 1  ;;  %s243_s7 = scalar_lea.sflag [#allocation7], %s233_s29 }
  0x4f   : > { %s938_s6 = scalar_lea.vmem [#allocation6], %s583_s5 }
  0x50   : > { %749 = dma.done.wait (%p997_p13), %s243_s7, 32  }
  0x51   : > { %751 = vsyncadd (%p997_p13), %s243_s7, 4294967264  ;;  %vm309_vm0 = vcmask 3072   ;;  %v778_v0 = vmov 0.0   ;;  %vm317_vm1 = vcmask 1043456   ;;  %v312_v1 = vld [vmem:[%s237_s10] sm:$0xff]  ;;  %v363_v27 = vlaneseq  ;;  %p291_p7 = scmp.lt.s32.totalorder %s766_s15, 1 }
  0x52   : > { %310 = vst.msk [vmem:[#allocation2] sm:$0xf] %vm309_vm0, %v778_v0  ;;  %311 = vst.msk [vmem:[#allocation3] sm:$0xf] %vm309_vm0, %v778_v0  ;;  %v315_v2 = vcombine.high %v312_v1, %v312_v1  ;;  %v318_v3 = vsel %vm317_vm1, %v312_v1, -inf }
  0x53   : > { %v319_v4 = vrot.slane %v318_v3, 4  ;;  %v364_v32 = vshrl.u32 %v363_v27, 7  ;;  %v313_v39 = vld [vmem:[%s938_s6] sm:$0x3]  ;;  %s1006_s15 = smov (!%p291_p7, %s766_s15), 1 }
  0x54   : > { %v325_v5 = vsel %vm317_vm1, %v315_v2, -inf  ;;  %s584_s23 = sshll.u32 %s1006_s15, 2 }
  0x55   : > { %v320_v6 = vmax.f32 %v318_v3, %v319_v4  ;;  %v326_v7 = vrot.slane %v325_v5, 4  ;;  %v367_v37 = vsub.s32 0, %v364_v32  ;;  %v371_v38 = vsub.s32 1, %v364_v32  ;;  %s297_s11 = scalar_lea.vmem %s987_s2, %s584_s23  ;;  %s304_s18 = scalar_lea.vmem %s988_s3, %s584_s23 }
  0x57   : > { %v321_v8 = vrot.slane %v320_v6, 2  ;;  %v327_v9 = vmax.f32 %v325_v5, %v326_v7  ;;  %v368_v41 = vrot.slane %v313_v39, %v367_v37  ;;  %v372_v42 = vrot.slane %v313_v39, %v371_v38 }
  0x59   : > { %v322_v10 = vmax.f32 %v320_v6, %v321_v8  ;;  %v328_v11 = vrot.slane %v327_v9, 2  ;;  %vm373_vm2 = vcmp.eq.s32.totalorder %v364_v32, %v368_v41  ;;  %vm374_vm3 = vcmp.eq.s32.totalorder %v364_v32, %v372_v42  ;;  %v379_v60 = vld [vmem:[#allocation2] sm:$0xf]  ;;  %v396_v63 = vld [vmem:[#allocation3] sm:$0xf] }
  0x5a   : > { %v586_v44 = vsel %vm373_vm2, 1.0, %v778_v0  ;;  %v587_v45 = vsel %vm374_vm3, 1.0, %v778_v0 }
  0x5b   : > { %v323_v12 = vrot.slane %v322_v10, 1  ;;  %v329_v13 = vmax.f32 %v327_v9, %v328_v11  ;;  %v382_v48 = vcombine.low %v586_v44, %v587_v45 }
  0x5d   : > { %v324_v14 = vmax.f32 %v322_v10, %v323_v12  ;;  %v330_v15 = vrot.slane %v329_v13, 1 }
  0x5f   : > { %v331_v16 = vmax.f32 %v329_v13, %v330_v15 }
  0x61   : > { %v334_v17 = vcombine.low %v324_v14, %v331_v16 }
  0x63   : > { %v336_v18 = vsub.f32 %v312_v1, %v334_v17 }
  0x65   : > { %v337_v19 = vmul.f32 1.442695, %v336_v18 }
  0x67   : > { %654 = vpow2.f32 %v337_v19 }
  0x71   : > { %v655_v20 = vpop.eup %654 }
  0x72   : > { %v340_v21 = vcombine.high %v655_v20, %v655_v20  ;;  %v342_v22 = vsel %vm317_vm1, %v655_v20, 0.0 }
  0x73   : > { %v343_v23 = vrot.slane %v342_v22, 4 }
  0x74   : > { %v349_v24 = vsel %vm317_vm1, %v340_v21, 0.0 }
  0x75   : > { %v344_v25 = vadd.f32 %v343_v23, %v342_v22  ;;  %v350_v26 = vrot.slane %v349_v24, 4 }
  0x77   : > { %v345_v28 = vrot.slane %v344_v25, 2  ;;  %v351_v29 = vadd.f32 %v350_v26, %v349_v24 }
  0x79   : > { %v346_v30 = vadd.f32 %v345_v28, %v344_v25  ;;  %v352_v31 = vrot.slane %v351_v29, 2 }
  0x7b   : > { %v347_v33 = vrot.slane %v346_v30, 1  ;;  %v353_v34 = vadd.f32 %v352_v31, %v351_v29 }
  0x7d   : > { %v348_v35 = vadd.f32 %v347_v33, %v346_v30  ;;  %v354_v36 = vrot.slane %v353_v34, 1 }
  0x7f   : > { %v355_v40 = vadd.f32 %v354_v36, %v353_v34  ;;  %656 = vrcp.f32 %v348_v35 }
  0x81   : > { %658 = vrcp.f32 %v355_v40 }
  0x89   : > { %v657_v43 = vpop.eup %656 }
  0x8b   : > { %v659_v46 = vpop.eup %658 }
  0x8c   : > { %v360_v47 = vcombine.low %v657_v43, %v659_v46 }
  0x8e   : > { %v362_v49 = vmul.f32 %v655_v20, %v360_v47 }
  0x90   : > { %v384_v50 = vmul.f32 %v382_v48, %v362_v49  ;;  %v397_v51 = vadd.f32 %v382_v48, %v362_v49 }
  0x92   : > { %v386_v52 = vcombine.high %v384_v50, %v384_v50  ;;  %v388_v53 = vsel %vm317_vm1, %v384_v50, 0.0  ;;  %v399_v54 = vcombine.high %v397_v51, %v397_v51  ;;  %v401_v56 = vsel %vm317_vm1, %v397_v51, 0.0 }
  0x94   : > { %v389_v55 = vsel %vm317_vm1, %v386_v52, 0.0  ;;  %v402_v57 = vsel %vm317_vm1, %v399_v54, 0.0 }
  0x95   : > { %v390_v58 = vadd.f32 %v389_v55, %v388_v53  ;;  %v403_v59 = vadd.f32 %v402_v57, %v401_v56 }
  0x97   : > { %391 = vadd.xlane.f32.xlu0 %v390_v58 }
  0x9b   : > { %404 = vadd.xlane.f32.xlu0 %v403_v59 }
 0x124   : > { %v392_v61 = vpop.xlane.xlu0 %391 }
 0x125   : > { %v393_v62 = vadd.f32 %v392_v61, %v379_v60 }
 0x127   : > { %395 = vst.msk [vmem:[#allocation2] sm:$0xf] %vm309_vm0, %v393_v62 }
 0x128   : > { %v405_v0 = vpop.xlane.xlu0 %404 }
 0x129   : > { %v406_v1 = vadd.f32 %v405_v0, %v396_v63 }
 0x12b   : > { %407 = vst.msk [vmem:[#allocation3] sm:$0xf] %vm309_vm0, %v406_v1 }
 0x12e   : > { %v411_v2 = vld [vmem:[#allocation2] sm:$0xf] }
 0x12f   : > { %412 = vst.msk [vmem:[%s297_s11] sm:$0xf] %vm309_vm0, %v411_v2 }
 0x132   : > { %v413_v3 = vld [vmem:[#allocation3] sm:$0xf] }
 0x133   : > { %414 = vst.msk [vmem:[%s304_s18] sm:$0xf] %vm309_vm0, %v413_v3 }
 0x134 PF: > { %s20_s17 = sadd.s32 1, %s774_s17   ;;  %s998_s12 = smov %s758_s13 }
 0x135   : > { %p17_p9 = scmp.ge.s32.totalorder %s20_s17, 4   ;;  %s999_s13 = smov %s762_s14 }
 0x136   : > { %s1000_s14 = smov %s848_s24  ;;  %s1001_s15 = smov %s770_s16 }
 0x137   : > { %s1002_s16 = smov %s1004_s19  ;;  %19 = sbr.rel (!%p17_p9) target bundleno = 6 (0x6), region = 101 }
 0x13e   :  { %460 = vsyncpa [#allocation5], 1 }
 0x13f   :  { %462 = vsyncpa [#allocation5 + $0x1], 1 }
 0x140   :  { %463 = vsyncpa [#allocation7], 1 }
 0x141   :  { %465 = vsyncpa [#allocation7 + $0x1], 1 }

</bundles_post_ra>
